<compile_context>
chip_gen: v7x
topology: tpu7x:2x2x1
jax: 0.10.0
libtpu: 0.0.40
codegen_flags: <defaults>
</compile_context>

<pallas_src>
import jax
import jax.numpy as jnp
from jax.experimental import pallas as pl
from jax.experimental.pallas import tpu as pltpu


_SUBLANE = 8
_LANE = 128
_MXU = 256            # tile granule for feature/dim axes (v6e/v7x MXU width)
_SPARSE_TB = 8        # examples per grid step in the sparse gather-decoder


def _round_up(x: int, m: int) -> int:
    return (x + m - 1) // m * m


def _pick_tile(total: int, preferred: int, granule: int) -> int:
    """Largest multiple of `granule` <= `preferred` that divides `total`
    (`total` is always a multiple of `granule` here because we pad)."""
    if total <= preferred:
        return total
    t = max((preferred // granule) * granule, granule)
    while t > granule and total % t:
        t -= granule
    return t


def _vmem_limit_bytes() -> int:
    """~75% of this generation's physical VMEM (fallback: 48 MiB)."""
    cap = 64 * 1024 * 1024
    try:
        cap = int(getattr(pltpu.get_tpu_info(), "vmem_capacity_bytes", cap))
    except Exception:
        pass
    return max(int(cap * 0.75), 32 * 1024 * 1024)


# ----------------------------------------------------------------------------
# Kernels
# ----------------------------------------------------------------------------
def _encoder_kernel(x_ref, w_enc_ref, b_eff_ref, out_ref):
    # Grid (Fp//tf, Bp//tb), f outermost: the (Dp, tf) W_enc slab's block index
    # is constant across the inner batch loop, so it is DMA'd once per f-tile
    # (weight-stationary).  Full-D contraction per step -> no accumulator.
    # x_ref:     (tb, Dp) bf16
    # w_enc_ref: (Dp, tf) bf16
    # b_eff_ref: (1, tf)  f32   effective bias = b_enc - b_dec @ W_enc
    # out_ref:   (tb, tf) f32   post-ReLU feature activations
    out_ref[...] = jnp.maximum(
        jnp.dot(x_ref[...], w_enc_ref[...],
                preferred_element_type=jnp.float32) + b_eff_ref[...],
        0.0)


def _sparse_decoder_kernel(idx_sref, vals_ref, w_hbm_ref, b_dec_ref,
                           out_ref, rows_ref, sem_ref):
    # Grid (Bp//TB,): each step handles TB examples.  The K selected W_dec rows
    # per example are gathered with manual, double-buffered DMAs (row indices
    # come from the scalar-prefetched SMEM table), then reduced in one shot:
    #   out[b] = sum_k vals[b, k] * W_dec[idx[b, k], :] + b_dec
    # idx_sref:  SMEM  [Bp*K] int32   (scalar-prefetched)
    # vals_ref:  VMEM  (TB, K, 1) f32 (top-k values, lane-broadcast over D)
    # w_hbm_ref: HBM   [Fp, Dp] bf16  (memory_space=pl.ANY)
    # b_dec_ref: VMEM  (1, Dp)  f32
    # out_ref:   VMEM  (TB, Dp) f32
    # rows_ref:  VMEM  (2, TB, K, Dp) bf16 scratch (double buffer)
    # sem_ref:   DMA semaphores (2,)
    TB, K, _ = vals_ref.shape
    bi = pl.program_id(0)
    nb = pl.num_programs(0)
    slot = bi & 1

    def gather(target_bi, target_slot, start):
        base = target_bi * (TB * K)

        @pl.loop(0, TB * K)
        def _(j):
            bq = j // K
            kq = j - bq * K
            row = idx_sref[base + j]
            cp = pltpu.make_async_copy(
                w_hbm_ref.at[pl.ds(row, 1), :],
                rows_ref.at[target_slot, bq, pl.ds(kq, 1), :],
                sem_ref.at[target_slot])
            if start:
                cp.start()
            else:
                cp.wait()

    @pl.when(bi == 0)
    def _():
        gather(0, 0, start=True)                 # prime slot 0

    @pl.when(bi + 1 < nb)
    def _():
        gather(bi + 1, 1 - slot, start=True)     # prefetch next step's rows

    gather(bi, slot, start=False)                # wait for this step's rows

    rows = rows_ref[slot].astype(jnp.float32)    # (TB, K, Dp)
    out_ref[...] = jnp.sum(vals_ref[...] * rows, axis=1) + b_dec_ref[...]


def _dense_decoder_kernel(f_ref, w_dec_ref, b_dec_ref, out_ref):
    # Grid (Bp//tb, Dp//td, Fp//tf); F-reduction innermost.  Accumulates
    # directly into the resident f32 output block (no scratch).  Features stay
    # f32; W_dec is upcast per tile so this matches the f32 reference closely.
    r = pl.program_id(2)

    @pl.when(r == 0)
    def _():
        out_ref[...] = jnp.zeros_like(out_ref)

    out_ref[...] += jnp.dot(f_ref[...], w_dec_ref[...].astype(jnp.float32),
                            preferred_element_type=jnp.float32)

    @pl.when(r == pl.num_programs(2) - 1)
    def _():
        out_ref[...] += b_dec_ref[...]


# ----------------------------------------------------------------------------
# Wrapper
# ----------------------------------------------------------------------------
class StructuredAutoEncoderTopKPallas:
    """Pallas-TPU forward for StructuredAutoEncoderTopK (dense mvm instance)."""

    def __init__(self, activation_dim: int, dict_size: int, k: int, *,
                 tile_b: int = 256, tile_f: int = 2048, tile_d: int = 1024):
        self.activation_dim = activation_dim
        self.dict_size = dict_size
        self.k = k
        self.tile_b, self.tile_f, self.tile_d = tile_b, tile_f, tile_d

        self._dpad = _round_up(activation_dim, _MXU)
        self._fpad = _round_up(dict_size, _MXU)
        self._vmem_limit = _vmem_limit_bytes()

        # Parameters (zero-init like the PyTorch module), padded lane-dense;
        # padding regions stay exactly zero.
        # TODO(synk): encoder_mvm/decoder_mvm are abstract in the PyTorch base
        # class; instantiated here as dense bf16 matrices (f32 accumulation).
        self.encoder_bias = jnp.zeros((1, self._fpad), jnp.float32)
        self.b_dec = jnp.zeros((1, self._dpad), jnp.float32)
        self.w_enc = jnp.zeros((self._dpad, self._fpad), jnp.bfloat16)
        self.w_dec = jnp.zeros((self._fpad, self._dpad), jnp.bfloat16)
        self.b_eff = jnp.zeros((1, self._fpad), jnp.float32)

    # -- parameter loading -----------------------------------------------------
    def load_dense_params(self, w_enc_DF, w_dec_FD,
                          encoder_bias_F=None, b_dec_D=None):
        D, F = self.activation_dim, self.dict_size
        self.w_enc = jnp.zeros((self._dpad, self._fpad), jnp.bfloat16
                               ).at[:D, :F].set(jnp.asarray(w_enc_DF, jnp.bfloat16))
        self.w_dec = jnp.zeros((self._fpad, self._dpad), jnp.bfloat16
                               ).at[:F, :D].set(jnp.asarray(w_dec_FD, jnp.bfloat16))
        if encoder_bias_F is not None:
            self.encoder_bias = jnp.zeros((1, self._fpad), jnp.float32
                                          ).at[0, :F].set(jnp.asarray(encoder_bias_F, jnp.float32))
        if b_dec_D is not None:
            self.b_dec = jnp.zeros((1, self._dpad), jnp.float32
                                   ).at[0, :D].set(jnp.asarray(b_dec_D, jnp.float32))
        # Effective encoder bias, cached once: W_enc(x - b_dec) + b_enc
        #   == x @ W_enc + (b_enc - b_dec @ W_enc).
        # bf16-operand matvec -> no f32 copy of W_enc, no per-forward GEMV.
        self.b_eff = self.encoder_bias - jnp.dot(
            self.b_dec.astype(jnp.bfloat16), self.w_enc,
            preferred_element_type=jnp.float32)

    # -- encoder ---------------------------------------------------------------
    def _encoder_tiles(self, Bp):
        Dp, Fp = self._dpad, self._fpad
        tb = _pick_tile(Bp, self.tile_b, _SUBLANE)
        tf = _pick_tile(Fp, self.tile_f, _MXU)
        budget = int(self._vmem_limit * 0.9)

        def fits(tb_, tf_):
            # double-buffered x / W slab / bias / out blocks
            return (2 * tb_ * Dp * 2 + 2 * Dp * tf_ * 2
                    + 2 * _SUBLANE * tf_ * 4 + 2 * tb_ * tf_ * 4) <= budget

        while not fits(tb, tf) and tf > _MXU:
            tf = _pick_tile(Fp, max(tf // 2, _MXU), _MXU)
        while not fits(tb, tf) and tb > _SUBLANE:
            tb = _pick_tile(Bp, max(tb // 2, _SUBLANE), _SUBLANE)
        return tb, tf

    def _encoder_post_relu(self, x):
        B, D = x.shape
        assert D == self.activation_dim
        Dp, Fp = self._dpad, self._fpad
        Bp = _round_up(B, _SUBLANE)          # pad to sublanes only (<8 waste)
        tb, tf = self._encoder_tiles(Bp)

        xp = jnp.pad(x.astype(jnp.bfloat16), ((0, Bp - B), (0, Dp - D)))

        out = pl.pallas_call(
            _encoder_kernel,
            out_shape=jax.ShapeDtypeStruct((Bp, Fp), jnp.float32),
            grid_spec=pltpu.PrefetchScalarGridSpec(
                num_scalar_prefetch=0,
                # f outermost: weight-stationary W_enc slab and the v7x
                # core-parallel axis (each core gets a different W slab).
                grid=(Fp // tf, Bp // tb),
                in_specs=[
                    pl.BlockSpec((tb, Dp), lambda f, b: (b, 0)),
                    pl.BlockSpec((Dp, tf), lambda f, b: (0, f)),
                    pl.BlockSpec((1, tf), lambda f, b: (0, f)),
                ],
                out_specs=pl.BlockSpec((tb, tf), lambda f, b: (b, f)),
            ),
            compiler_params=pltpu.CompilerParams(
                dimension_semantics=("parallel", "parallel"),
                vmem_limit_bytes=self._vmem_limit,
            ),
        )(xp, self.w_enc, self.b_eff)
        return out[:B, :self.dict_size]

    # -- decoders --------------------------------------------------------------
    def _sparse_decode(self, top_vals_BK, top_idx_BK):
        """x_hat[b] = sum_k vals[b,k] * W_dec[idx[b,k], :] + b_dec  (K-sparse)."""
        B, K = top_vals_BK.shape
        Dp = self._dpad
        TB = min(_SPARSE_TB, _round_up(B, _SUBLANE))
        Bp = _round_up(B, TB)
        pad = Bp - B
        idx_flat = jnp.pad(top_idx_BK.astype(jnp.int32),
                           ((0, pad), (0, 0))).reshape(Bp * K)
        vals3 = jnp.pad(top_vals_BK.astype(jnp.float32),
                        ((0, pad), (0, 0)))[..., None]          # (Bp, K, 1)

        out = pl.pallas_call(
            _sparse_decoder_kernel,
            out_shape=jax.ShapeDtypeStruct((Bp, Dp), jnp.float32),
            grid_spec=pltpu.PrefetchScalarGridSpec(
                num_scalar_prefetch=1,                   # row indices -> SMEM
                grid=(Bp // TB,),
                in_specs=[
                    # top-k values: regular VMEM blocks (NOT SMEM).
                    pl.BlockSpec((TB, K, 1), lambda b, idx_ref: (b, 0, 0)),
                    # W_dec stays in HBM; rows are gathered by manual DMA.
                    pl.BlockSpec(memory_space=pl.ANY),
                    pl.BlockSpec((1, Dp), lambda b, idx_ref: (0, 0)),
                ],
                out_specs=pl.BlockSpec((TB, Dp), lambda b, idx_ref: (b, 0)),
                scratch_shapes=[
                    pltpu.VMEM((2, TB, K, Dp), self.w_dec.dtype),
                    pltpu.SemaphoreType.DMA((2,)),
                ],
            ),
            compiler_params=pltpu.CompilerParams(
                # Manual double-buffering assumes sequential grid traversal.
                dimension_semantics=("arbitrary",),
                vmem_limit_bytes=self._vmem_limit,
            ),
        )(idx_flat, vals3, self.w_dec, self.b_dec)
        return out[:B, :self.activation_dim]

    def decode(self, f_BF):
        """General decode (dense decoder_mvm + b_dec); not on the hot path."""
        B, F = f_BF.shape
        assert F == self.dict_size
        Dp, Fp = self._dpad, self._fpad
        Bp = _round_up(B, _SUBLANE)
        tb = _pick_tile(Bp, self.tile_b, _SUBLANE)
        td = _pick_tile(Dp, self.tile_d, _MXU)
        tf = _pick_tile(Fp, self.tile_f, _MXU)
        budget = int(self._vmem_limit * 0.9)

        def fits(tf_):
            return (2 * tb * tf_ * 4 + 2 * tf_ * td * 2 + tf_ * td * 4
                    + 2 * tb * td * 4 + 2 * _SUBLANE * td * 4) <= budget

        while not fits(tf) and tf > _MXU:
            tf = _pick_tile(Fp, max(tf // 2, _MXU), _MXU)

        fp = jnp.pad(f_BF.astype(jnp.float32), ((0, Bp - B), (0, Fp - F)))
        out = pl.pallas_call(
            _dense_decoder_kernel,
            out_shape=jax.ShapeDtypeStruct((Bp, Dp), jnp.float32),
            grid_spec=pltpu.PrefetchScalarGridSpec(
                num_scalar_prefetch=0,
                grid=(Bp // tb, Dp // td, Fp // tf),
                in_specs=[
                    pl.BlockSpec((tb, tf), lambda b, d, f: (b, f)),
                    pl.BlockSpec((tf, td), lambda b, d, f: (f, d)),
                    pl.BlockSpec((1, td), lambda b, d, f: (0, d)),
                ],
                out_specs=pl.BlockSpec((tb, td), lambda b, d, f: (b, d)),
            ),
            compiler_params=pltpu.CompilerParams(
                dimension_semantics=("parallel", "parallel", "arbitrary"),
                vmem_limit_bytes=self._vmem_limit,
            ),
        )(fp, self.w_dec, self.b_dec)
        return out[:B, :self.activation_dim]

    # -- module API ------------------------------------------------------------
    def _scatter_topk(self, batch, vals_BK, idx_BK):
        rows = jnp.arange(batch)[:, None]
        return jnp.zeros((batch, self.dict_size), jnp.float32
                         ).at[rows, idx_BK].set(vals_BK)

    def encode(self, x, return_topk=False):
        post_relu_BF = self._encoder_post_relu(x)
        top_vals_BK, top_idx_BK = jax.lax.top_k(post_relu_BF, self.k)
        encoded_BF = self._scatter_topk(x.shape[0], top_vals_BK, top_idx_BK)
        if return_topk:
            return encoded_BF, top_vals_BK, top_idx_BK
        return encoded_BF

    def forward(self, x, output_features=False):
        post_relu_BF = self._encoder_post_relu(x)
        top_vals_BK, top_idx_BK = jax.lax.top_k(post_relu_BF, self.k)
        # K-sparse gather-decode straight from (vals, idx): no dense [B, F]
        # scatter and an F/K reduction in decoder FLOPs / W_dec traffic.
        x_hat_BD = self._sparse_decode(top_vals_BK, top_idx_BK)
        if output_features:
            encoded_BF = self._scatter_topk(x.shape[0], top_vals_BK, top_idx_BK)
            return x_hat_BD, encoded_BF
        return x_hat_BD


# ----------------------------------------------------------------------------
# Pure-JAX reference (module semantics at the kernels' precision: bf16 MXU
# operands for the encoder, f32 accumulation, b_dec algebraically folded into
# the encoder bias with a bf16 matvec — identical math to W_enc(x-b_dec)+b_enc).
# ----------------------------------------------------------------------------
def reference_forward(model, x):
    D, F = model.activation_dim, model.dict_size
    w_enc = model.w_enc[:D, :F]                          # bf16
    w_dec = model.w_dec[:F, :D].astype(jnp.float32)
    b_enc = model.encoder_bias[0, :F]
    b_dec = model.b_dec[0, :D]
    b_eff = b_enc - jnp.dot(b_dec.astype(jnp.bfloat16), w_enc,
                            preferred_element_type=jnp.float32)
    pre = jnp.dot(x.astype(jnp.bfloat16), w_enc,
                  preferred_element_type=jnp.float32) + b_eff
    post_relu = jnp.maximum(pre, 0.0)
    vals, idx = jax.lax.top_k(post_relu, model.k)
    rows = jnp.arange(x.shape[0])[:, None]
    enc = jnp.zeros_like(post_relu).at[rows, idx].set(vals)
    x_hat = enc @ w_dec + b_dec
    return x_hat, enc, post_relu


if __name__ == "__main__":
    B, D, F, K = 16, 256, 512, 8   # batch, activation_dim, dict_size, k

    key = jax.random.PRNGKey(0)
    k_we, k_wd, k_be, k_bd, k_x = jax.random.split(key, 5)

    # Small tiles so the tiny demo shapes exercise the multi-step grids,
    # the decode() reduction and the sparse decoder's double buffering;
    # production defaults are tile_b=256, tile_f=2048, tile_d=1024.
    model = StructuredAutoEncoderTopKPallas(D, F, K,
                                            tile_b=8, tile_f=256, tile_d=256)
    scale = 1.0 / jnp.sqrt(jnp.float32(D))
    model.load_dense_params(
        w_enc_DF=jax.random.normal(k_we, (D, F), jnp.float32) * scale,
        w_dec_FD=jax.random.normal(k_wd, (F, D), jnp.float32) * scale,
        encoder_bias_F=0.1 * jax.random.normal(k_be, (F,), jnp.float32),
        b_dec_D=0.1 * jax.random.normal(k_bd, (D,), jnp.float32),
    )
    x = jax.random.normal(k_x, (B, D), jnp.float32)

    x_hat, encoded = model.forward(x, output_features=True)
    x_hat = jax.block_until_ready(x_hat)
    encoded = jax.block_until_ready(encoded)

    x_hat_ref, enc_ref, post_relu_ref = reference_forward(model, x)

    # Encoder kernel check (pre-top-k, selection-free).
    post_relu = jax.block_until_ready(model._encoder_post_relu(x))
    assert post_relu.shape == (B, F)
    assert jnp.allclose(post_relu, post_relu_ref, rtol=2e-3, atol=2e-3)

    # Full forward: encoder kernel + top-k glue + sparse gather-decode kernel.
    assert x_hat.shape == (B, D) and encoded.shape == (B, F)
    assert jnp.allclose(x_hat, x_hat_ref, rtol=5e-3, atol=5e-3)
    assert jnp.allclose(encoded, enc_ref, rtol=5e-3, atol=5e-3)
    assert int(jnp.max(jnp.sum(encoded != 0.0, axis=-1))) <= K

    # General dense decode() path (f32 feature operand).
    x_hat_dense = jax.block_until_ready(model.decode(encoded))
    assert jnp.allclose(x_hat_dense, x_hat_ref, rtol=5e-3, atol=5e-3)

    # Non-tile-aligned batch exercises the sublane-padding path.
    x_odd = x[:13]
    x_hat_odd = jax.block_until_ready(model.forward(x_odd))
    x_hat_odd_ref, _, _ = reference_forward(model, x_odd)
    assert x_hat_odd.shape == (13, D)
    assert jnp.allclose(x_hat_odd, x_hat_odd_ref, rtol=5e-3, atol=5e-3)

    print("KERNEL_OK")
</pallas_src>

<mosaic_0001>
module attributes {stable_mosaic.version = 11 : i64} {
  func.func @_encoder_kernel(%arg0: i32, %arg1: i32, %arg2: memref<8x256xbf16, #tpu.memory_space<vmem>>, %arg3: memref<256x256xbf16, #tpu.memory_space<vmem>>, %arg4: memref<1x256xf32, #tpu.memory_space<vmem>>, %arg5: memref<8x256xf32, #tpu.memory_space<vmem>>) attributes {dimension_semantics = [#tpu.dimension_semantics<parallel>, #tpu.dimension_semantics<parallel>], iteration_bounds = array<i64: 2, 2>, scalar_prefetch = 0 : i64, scratch_operands = 0 : i64, tpu.core_type = #tpu.core_type<tc>, window_params = [{transform_indices = @transform_0, window_bounds = array<i64: 8, 256>}, {transform_indices = @transform_1, window_bounds = array<i64: 256, 256>}, {transform_indices = @transform_2, window_bounds = array<i64: 1, 256>}, {transform_indices = @transform_3, window_bounds = array<i64: 8, 256>}]} {
    %c0 = arith.constant 0 : index
    %c0_0 = arith.constant 0 : index
    %0 = vector.load %arg2[%c0, %c0_0] : memref<8x256xbf16, #tpu.memory_space<vmem>>, vector<8x256xbf16>
    %c0_1 = arith.constant 0 : index
    %c0_2 = arith.constant 0 : index
    %1 = vector.load %arg3[%c0_1, %c0_2] : memref<256x256xbf16, #tpu.memory_space<vmem>>, vector<256x256xbf16>
    %cst = arith.constant dense<0.000000e+00> : vector<8x256xf32>
    %2 = tpu.matmul %0, %1, %cst {dimension_numbers = #tpu.dot_dimension_numbers<[1], [0], [0], [1], [0, 0, 1, 1], [], []>} : vector<8x256xbf16>, vector<256x256xbf16>, vector<8x256xf32> -> vector<8x256xf32>
    %c0_3 = arith.constant 0 : index
    %c0_4 = arith.constant 0 : index
    %3 = vector.load %arg4[%c0_3, %c0_4] : memref<1x256xf32, #tpu.memory_space<vmem>>, vector<1x256xf32>
    %4 = vector.broadcast %3 : vector<1x256xf32> to vector<8x256xf32>
    %5 = arith.addf %2, %4 : vector<8x256xf32>
    %cst_5 = arith.constant 0.000000e+00 : f32
    %6 = vector.broadcast %cst_5 : f32 to vector<8x256xf32>
    %7 = arith.maximumf %5, %6 : vector<8x256xf32>
    %c0_6 = arith.constant 0 : index
    %c0_7 = arith.constant 0 : index
    %8 = vector.load %arg5[%c0_6, %c0_7] : memref<8x256xf32, #tpu.memory_space<vmem>>, vector<8x256xf32>
    tpu.vector_store %arg5[%c0_6, %c0_7], %7 {strides = array<i32>} : memref<8x256xf32, #tpu.memory_space<vmem>>, vector<8x256xf32>,
    return
  }
  func.func @transform_0(%arg0: i32, %arg1: i32) -> (i32, i32) {
    %c0_i32 = arith.constant 0 : i32
    %c0_i32_0 = arith.constant 0 : i32
    return %arg1, %c0_i32 : i32, i32
  }
  func.func @transform_1(%arg0: i32, %arg1: i32) -> (i32, i32) {
    %c0_i32 = arith.constant 0 : i32
    %c0_i32_0 = arith.constant 0 : i32
    return %c0_i32, %arg0 : i32, i32
  }
  func.func @transform_2(%arg0: i32, %arg1: i32) -> (i32, i32) {
    %c0_i32 = arith.constant 0 : i32
    %c0_i32_0 = arith.constant 0 : i32
    return %c0_i32, %arg0 : i32, i32
  }
  func.func @transform_3(%arg0: i32, %arg1: i32) -> (i32, i32) {
    %c0_i32 = arith.constant 0 : i32
    return %arg1, %arg0 : i32, i32
  }
}

</mosaic_0001>

<bundles_post_ra>
// kernel: tpu_custom_call.1
= control target key start
LH: loop header
LB: loop body
LE: loop exit
PB: predicated region body
PF: predicated region fallthrough
CT: control target
= control target key end

     0   :  { %s1501_s0 = inlined_call_operand.hbm [shape: bf16[16,256], index: 0, kind: input, shape index: {}]   ;;  %s1502_s1 = inlined_call_operand.hbm [shape: bf16[256,512], index: 1, kind: input, shape index: {}]   ;;  %s1503_s2 = inlined_call_operand.vmem [shape: f32[1,512], index: 2, kind: input, shape index: {}]   ;;  %s1504_s3 = inlined_call_operand.hbm [shape: f32[16,512], index: 3, kind: output, shape index: {}]  }
   0x1   :  { %1512 = sst [smem:[#allocation18_spill]] %s1501_s0 }
   0x2   :  { %8 = vsyncpa [#allocation3], 0 }
   0x3   :  { %10 = vsyncpa [#allocation3 + $0x1], 0 }
   0x4   :  { %11 = vsyncpa [#allocation6], 0 }
   0x5   :  { %13 = vsyncpa [#allocation6 + $0x1], 0 }
   0x6   :  { %14 = vsyncpa [#allocation4], 0 }
   0x7   :  { %16 = vsyncpa [#allocation4 + $0x1], 0  ;;  %s1131_s12 = smov 0   ;;  %s1133_s13 = smov 0  }
   0x8   :  { %s1135_s14 = smov 0   ;;  %s1137_s15 = smov 0  }
   0x9   :  { %s1139_s16 = smov 0   ;;  %s1141_s17 = smov 0  }
   0xa   :  { %s1143_s18 = smov 0   ;;  %s1145_s19 = smov 0  }
   0xb   :  { %s1147_s20 = smov 0   ;;  %s1149_s21 = smov 0  }
   0xc   :  { %s1151_s22 = smov 0   ;;  %s1153_s23 = smov 0  }
   0xd   :  { %s1155_s24 = smov 0   ;;  %s1157_s25 = smov 0  }
   0xe LB: > { %1513 = sst [smem:[#allocation11_spill]] %s1095_s23  ;;  %s652_s26 = sadd.s32 4294967295, %s1103_s25   ;;  %s1103_s25 = sphi %s1157_s25, %s22_s25   ;;  %s1099_s24 = sphi %s1155_s24, %s1544_s24   ;;  %s1095_s23 = sphi %s1153_s23, %s1543_s23   ;;  %s1091_s22 = sphi %s1151_s22, %s1542_s22   ;;  %s1087_s21 = sphi %s1149_s21, %s1541_s21   ;;  %s1083_s20 = sphi %s1147_s20, %s1553_s20   ;;  %s1079_s19 = sphi %s1145_s19, %s1552_s19   ;;  %s1075_s18 = sphi %s1143_s18, %s1551_s18   ;;  %s1071_s17 = sphi %s1141_s17, %s1550_s17   ;;  %s1067_s16 = sphi %s1139_s16, %s1549_s16   ;;  %s1063_s15 = sphi %s1137_s15, %s1548_s15   ;;  %s1059_s14 = sphi %s1135_s14, %s1547_s14   ;;  %s1055_s13 = sphi %s1133_s13, %s1546_s13   ;;  %s1051_s12 = sphi %s1131_s12, %s1545_s12  }
   0xf   : > { %1514 = sst [smem:[#allocation12_spill]] %s1099_s24  ;;  %s31_s28 = sadd.s32 1, %s1095_s23 }
  0x10   : > { %s34_s29 = sadd.s32 1, %s1099_s24  ;;  %p32_p0 = scmp.ge.s32.totalorder %s31_s28, 2 }
  0x11   : > { %s41_s30 = sadd.s32 1, %s1083_s20  ;;  %p48_p1 = scmp.ne.s32.totalorder %s1083_s20, %s1079_s19 }
  0x12   : > { %p49_p2 = scmp.eq.s32.totalorder %s1103_s25, 0  ;;  %s1555_s28 = smov (%p32_p0, %s31_s28), 0 }
  0x13   : > { %1515 = sst [smem:[#allocation13_spill]] %s1555_s28  ;;  %s1557_s29 = smov (!%p32_p0, %s34_s29), %s1099_s24 }
  0x14   : > { %s38_s4 = ssub.s32 %s1095_s23, %s1555_s28  ;;  %p1214_p3 = por %p49_p2, %p48_p1 }
  0x15   : > { %p36_p4 = scmp.ge.s32.totalorder %s1557_s29, 2  ;;  %p39_p5 = scmp.eq.s32.totalorder %s38_s4, 0 }
  0x16   : > { %p54_p6 = scmp.ne.s32.totalorder %s1079_s19, %s1075_s18  ;;  %p55_p7 = scmp.eq.s32.totalorder %s652_s26, 0 }
  0x17   : > { %s1559_s29 = smov (%p36_p4, %s1557_s29), 0  ;;  %s67_s9 = sadd.s32 1, %s1071_s17 }
  0x18   : > { %1517 = sst [smem:[#allocation14_spill]] %s1559_s29  ;;  %p1226_p8 = por %p55_p7, %p54_p6 }
  0x19   : > { %s1224_s6 = scalar_select %p39_p5, %s1083_s20, %s41_s30  }
  0x1a   : > { %s1519_s7 = scalar_select %p1226_p8, 1, 0 }
  0x1b   : > { %1518 = sst [smem:[#allocation15_spill]] %s1224_s6  ;;  %s64_s8 = ssub.s32 %s1099_s24, %s1559_s29 }
  0x1c   : > { %p65_p9 = scmp.eq.s32.totalorder %s64_s8, 0  ;;  %p74_p10 = scmp.ne.s32.totalorder %s1071_s17, %s1067_s16 }
  0x1d   : > { %p80_p11 = scmp.ne.s32.totalorder %s1067_s16, %s1063_s15  ;;  %s118_s30 = sor.u32 %s64_s8, %s38_s4 }
  0x1e   : > { %s1238_s10 = scalar_select %p65_p9, %s1071_s17, %s67_s9  }
  0x1f   : > { %p1242_p12 = por %p74_p10, %p49_p2  ;;  %p1246_p13 = por %p80_p11, %p55_p7 }
  0x20   : > { %1520 = sst [smem:[#allocation16_spill]] %s1238_s10  ;;  %s121_s27 = sadd.s32 1, %s1059_s14 }
  0x21   : > { %s1522_s18 = scalar_select %p1246_p13, 1, 0 }
  0x22   : > { %p119_p0 = scmp.eq.s32.totalorder %s118_s30, 0  ;;  %p131_p1 = scmp.ne.s32.totalorder %s1059_s14, %s1055_s13 }
  0x23   : > { %p132_p4 = scmp.eq.s32.totalorder %s652_s26, 3  ;;  %p137_p5 = scmp.ne.s32.totalorder %s1055_s13, %s1051_s12 }
  0x24   : > { %s1258_s15 = scalar_select %p119_p0, %s1059_s14, %s121_s27  }
  0x25   : > { %p1260_p2 = por %p132_p4, %p131_p1  ;;  %s1525_s29 = sadd.s32 4294967294, %s1103_s25  }
  0x26   : > { %1523 = sst [smem:[#allocation17_spill]] %s1258_s15  ;;  %p138_p6 = scmp.eq.s32.totalorder %s1525_s29, 3 }
  0x27   : > { %s1524_s9 = scalar_select %p1260_p2, 1, 0 }
  0x28   : > { %p726_p7 = scmp.lt.s32.totalorder %s1103_s25, 4  ;;  %p1267_p9 = por %p138_p6, %p137_p5 }
  0x29   : > { %s158_s8 = sand.u32 1, %s1083_s20   ;;  %s707_s28 = sshll.u32 %s1095_s23, 7 }
  0x2a   : > { %s1526_s4 = scalar_select %p1267_p9, 1, 0 }
  0x2b   : > { %s656_s30 = sshll.u32 %s158_s8, 3  ;;  %s1527_s0 = sld [smem:[#allocation18_spill]] }
  0x2c   : > { %s162_s27 = scalar_lea.vmem [#allocation2], %s656_s30  ;;  %p1282_p10 = pnand %p726_p7, %p1214_p3 }
  0x2d   : > { %s170_s15 = sshll.u32 %s162_s27, 4  ;;  %p1288_p11 = pnand %p726_p7, %p1242_p12  ;;  %s1278_s15 = int_to_ptr.vmem [resolvable:$true] %s170_s15 }
  0x2e   : > { %p895_p5 = pneg %p1282_p10 }
  0x31   : > { %s1276_s10 = scalar_lea.hbm %s1527_s0, %s707_s28  ;;  %s159_s28 = scalar_lea.sflag [#allocation3], %s158_s8 }
  0x32   : > { %s893_s30 = scalar_lea.hbm %s1276_s10, 128  ;;  %s898_s11 = scalar_lea.hbm %s1527_s0, 256 }
  0x33   : > { %p894_p4 = scmp.ne.s32.totalorder %s1276_s10, %s893_s30  ;;  %p899_p12 = scmp.lt.u32.totalorder %s1276_s10, %s1527_s0 }
  0x34   : > { %p900_p7 = scmp.lt.u32.totalorder %s898_s11, %s893_s30  ;;  %p902_p1 = scmp.lt.u32.totalorder %s893_s30, %s1276_s10 }
  0x35   : > { %p896_p3 = pnand %p895_p5, %p894_p4 }
  0x36   : > { %p901_p0 = por %p900_p7, %p899_p12 }
  0x37   : > { %p897_p6 = pneg %p896_p3 }
  0x38   : > { %p903_p9 = por %p902_p1, %p901_p0 }
  0x3a   : > { %p904_p2 = pnand %p903_p9, %p897_p6 }
  0x3c   : > { %907 = shalt.err (!%p904_p2)
}
  0x3d   : > { %s908_s8 = scalar_lea.vmem %s1278_s15, 128  ;;  %s1105_s5 = smov [#allocation2]  }
  0x3e   : > { %p909_p4 = scmp.ne.s32.totalorder %s1278_s15, %s908_s8  ;;  %s913_s26 = sshll.u32 %s1105_s5, 4  ;;  %s914_s26 = int_to_ptr.vmem [resolvable:$false] %s913_s26 }
  0x3f   : > { %s915_s23 = scalar_lea.vmem %s914_s26, 256  ;;  %p916_p8 = scmp.lt.s32.totalorder %s1278_s15, %s914_s26 }
  0x40   : > { %p911_p3 = pnand %p909_p4, %p895_p5  ;;  %p917_p12 = scmp.lt.s32.totalorder %s915_s23, %s908_s8 }
  0x42   : > { %p912_p13 = pneg %p911_p3  ;;  %p918_p7 = por %p917_p12, %p916_p8 }
  0x44   : > { %p919_p0 = pnand %p918_p7, %p912_p13 }
  0x46   : > { %922 = shalt.err (!%p919_p0)
}
  0x47   : > { %718 = dma.hbm_to_vmem [thread:$0]  (!%p1282_p10), %s1276_s10, 128, %s1278_s15, %s159_s28  }
  0x48   : > { %p1530_p2 = scmp.lt.s32.totalorder %s1103_s25, 5  ;;  %p1531_p9 = scmp.ge.s32.totalorder %s1103_s25, 1 }
  0x49   : > { %s177_s11 = sand.u32 1, %s1071_s17   ;;  %s708_s27 = sshll.u32 %s1099_s24, 7 }
  0x4a   : > { %p1323_p1 = pnand %p1531_p9, %p1530_p2  ;;  %s659_s8 = sshll.u32 %s177_s11, 8 }
  0x4b   : > { %s1332_s26 = scalar_lea.hbm %s1502_s1, %s708_s27  ;;  %s181_s23 = scalar_lea.vmem [#allocation5], %s659_s8 }
  0x4c   : > { %s188_s10 = sshll.u32 %s181_s23, 4  ;;  %s1336_s15 = scalar_lea.sflag [#allocation6], %s177_s11  ;;  %s1334_s10 = int_to_ptr.vmem [resolvable:$true] %s188_s10 }
  0x4d   : > { %s923_s28 = scalar_lea.hbm %s1332_s26, 4096  ;;  %p925_p13 = pneg %p1288_p11 }
  0x4e   : > { %p924_p8 = scmp.ne.s32.totalorder %s1332_s26, %s923_s28  ;;  %s928_s29 = scalar_lea.hbm %s1502_s1, 8192 }
  0x4f   : > { %p929_p6 = scmp.lt.u32.totalorder %s1332_s26, %s1502_s1  ;;  %p930_p4 = scmp.lt.u32.totalorder %s928_s29, %s923_s28 }
  0x50   : > { %p926_p10 = pnand %p925_p13, %p924_p8  ;;  %p932_p12 = scmp.lt.u32.totalorder %s923_s28, %s1332_s26 }
  0x51   : > { %p931_p3 = por %p930_p4, %p929_p6 }
  0x52   : > { %p927_p5 = pneg %p926_p10 }
  0x53   : > { %p933_p7 = por %p932_p12, %p931_p3 }
  0x55   : > { %p934_p0 = pnand %p933_p7, %p927_p5 }
  0x57   : > { %937 = shalt.err (!%p934_p0)
}
  0x58   : > { %s938_s11 = scalar_lea.vmem %s1334_s10, 4096  ;;  %s1106_s8 = smov [#allocation5]  }
  0x59   : > { %p939_p2 = scmp.ne.s32.totalorder %s1334_s10, %s938_s11  ;;  %s943_s23 = sshll.u32 %s1106_s8, 4  ;;  %s944_s23 = int_to_ptr.vmem [resolvable:$false] %s943_s23 }
  0x5a   : > { %s945_s0 = scalar_lea.vmem %s944_s23, 8192  ;;  %p946_p10 = scmp.lt.s32.totalorder %s1334_s10, %s944_s23 }
  0x5b   : > { %p941_p9 = pnand %p939_p2, %p925_p13  ;;  %p947_p6 = scmp.lt.s32.totalorder %s945_s0, %s938_s11 }
  0x5d   : > { %p942_p8 = pneg %p941_p9  ;;  %p948_p4 = por %p947_p6, %p946_p10 }
  0x5f   : > { %p949_p3 = pnand %p948_p4, %p942_p8 }
  0x61   : > { %952 = shalt.err (!%p949_p3)
}
  0x62   : > { %s1107_s24 = smov 256   ;;  %s1108_s28 = smov 128  }
  0x63   : > { %s1109_s27 = smov 8   ;;  %208 = sbr.rel (%p1323_p1) target bundleno = 407 (0x197), region = 32 }
  0x64   : > { %721 = dma.hbm_to_vmem [thread:$0]  (!%p1288_p11), %s1332_s26, 4096, %s1334_s10, %s1336_s15, %s1107_s24, %s1108_s28, %s1109_s27  }
  0x65   : > { %s210_s5 = sand.u32 (!%p1323_p1), 1, %s1079_s19   ;;  %p1533_p13 = scmp.ne.s32.totalorder (!%p1323_p1), %s1519_s7, 0 }
  0x66   : > { %s1367_s29 = sshll.u32 (!%p1323_p1), %s210_s5, 3  ;;  %s211_s11 = scalar_lea.sflag (!%p1323_p1), [#allocation3], %s210_s5 }
  0x67   : > { %s214_s8 = scalar_lea.vmem (!%p1323_p1), [#allocation2], %s1367_s29 }
  0x6a   : > { %1038 = dma.done.wait (%p1533_p13), %s211_s11, 128  }
  0x6b   : > { %1040 = vsyncadd (%p1533_p13), %s211_s11, 4294967168  ;;  %s219_s6 = sand.u32 1, %s1067_s16   ;;  %p1534_p11 = scmp.ne.s32.totalorder %s1522_s18, 0 }
  0x6c   : > { %s664_s26 = sshll.u32 %s219_s6, 8  ;;  %s220_s10 = scalar_lea.sflag [#allocation6], %s219_s6 }
  0x6d   : > { %s1375_s30 = scalar_lea.vmem [#allocation5], %s664_s26 }
  0x6e   : > { %1042 = dma.done.wait (%p1534_p11), %s220_s10, 4096  }
  0x6f   : > { %1044 = vsyncadd (%p1534_p11), %s220_s10, 4294963200  ;;  %v843_v0 = vld [vmem:[%s1375_s30 + $0x4] ss:$8 sps:$4 sm:$0xff]   ;;  %v845_v1 = vld [vmem:[%s1375_s30] ss:$8 sps:$4 sm:$0xff]   ;;  %s666_s7 = sshll.u32 %s1091_s22, 1  ;;  %v297_v35 = vlaneseq }
  0x70   : > { %474 = vmatprep.subr.bf16.mxu0 %v843_v0  ;;  %v846_v2 = vld [vmem:[%s1375_s30 + $0x14] ss:$8 sps:$4 sm:$0xff]   ;;  %v848_v3 = vld [vmem:[%s1375_s30 + $0x10] ss:$8 sps:$4 sm:$0xff]   ;;  %v849_v4 = vld [vmem:[%s1375_s30 + $0x24] ss:$8 sps:$4 sm:$0xff]  }
  0x71   : > { %475 = vmatpush1.bf16.msra.mxu0 %v845_v1  ;;  %v851_v5 = vld [vmem:[%s1375_s30 + $0x20] ss:$8 sps:$4 sm:$0xff]   ;;  %v852_v6 = vld [vmem:[%s1375_s30 + $0x34] ss:$8 sps:$4 sm:$0xff]   ;;  %v854_v7 = vld [vmem:[%s1375_s30 + $0x30] ss:$8 sps:$4 sm:$0xff]  }
  0x72   : > { %476 = vmatprep.subr.bf16.mxu0 %v846_v2  ;;  %v855_v8 = vld [vmem:[%s1375_s30 + $0x44] ss:$8 sps:$4 sm:$0xff]   ;;  %v857_v9 = vld [vmem:[%s1375_s30 + $0x40] ss:$8 sps:$4 sm:$0xff]   ;;  %v858_v10 = vld [vmem:[%s1375_s30 + $0x54] ss:$8 sps:$4 sm:$0xff]  }
  0x73   : > { %v860_v11 = vld [vmem:[%s1375_s30 + $0x50] ss:$8 sps:$4 sm:$0xff]   ;;  %v861_v12 = vld [vmem:[%s1375_s30 + $0x64] ss:$8 sps:$4 sm:$0xff]   ;;  %v863_v15 = vld [vmem:[%s1375_s30 + $0x60] ss:$8 sps:$4 sm:$0xff]  }
  0x74   : > { %v262_v13 = vld [vmem:[%s214_s8] sm:$0xff]  ;;  %v867_v18 = vld [vmem:[%s1375_s30 + $0x84] ss:$8 sps:$4 sm:$0xff]   ;;  %v869_v19 = vld [vmem:[%s1375_s30 + $0x80] ss:$8 sps:$4 sm:$0xff]   ;;  %p257_p1 = scmp.lt.s32.totalorder %s666_s7, 3 }
  0x75   : > { %477 = vmatpush1.bf16.msra.mxu0 %v848_v3  ;;  %v668_v14 = vcombine.high %v262_v13, %v262_v13  ;;  %v864_v16 = vld [vmem:[%s1375_s30 + $0x74] ss:$8 sps:$4 sm:$0xff]   ;;  %v866_v17 = vld [vmem:[%s1375_s30 + $0x70] ss:$8 sps:$4 sm:$0xff]   ;;  %v873_v22 = vld [vmem:[%s1375_s30 + $0xa4] ss:$8 sps:$4 sm:$0xff]   ;;  %v667_v34 = vcombine.low %v262_v13, %v262_v13 }
  0x76   : > { %478 = vmatprep.subr.bf16.mxu0 %v849_v4  ;;  %v870_v20 = vld [vmem:[%s1375_s30 + $0x94] ss:$8 sps:$4 sm:$0xff]   ;;  %v872_v21 = vld [vmem:[%s1375_s30 + $0x90] ss:$8 sps:$4 sm:$0xff]   ;;  %v875_v23 = vld [vmem:[%s1375_s30 + $0xa0] ss:$8 sps:$4 sm:$0xff]  }
  0x77   : > { %506 = vmatprep.mubr.bf16.mxu0 %v668_v14  ;;  %v876_v24 = vld [vmem:[%s1375_s30 + $0xb4] ss:$8 sps:$4 sm:$0xff]   ;;  %v878_v25 = vld [vmem:[%s1375_s30 + $0xb0] ss:$8 sps:$4 sm:$0xff]   ;;  %v879_v26 = vld [vmem:[%s1375_s30 + $0xc4] ss:$8 sps:$4 sm:$0xff]  }
  0x78   : > { %v881_v27 = vld [vmem:[%s1375_s30 + $0xc0] ss:$8 sps:$4 sm:$0xff]   ;;  %v882_v28 = vld [vmem:[%s1375_s30 + $0xd4] ss:$8 sps:$4 sm:$0xff]   ;;  %v884_v29 = vld [vmem:[%s1375_s30 + $0xd0] ss:$8 sps:$4 sm:$0xff]  }
  0x79   : > { %479 = vmatpush1.bf16.msra.mxu0 %v851_v5  ;;  %v885_v30 = vld [vmem:[%s1375_s30 + $0xe4] ss:$8 sps:$4 sm:$0xff]   ;;  %v887_v31 = vld [vmem:[%s1375_s30 + $0xe0] ss:$8 sps:$4 sm:$0xff]   ;;  %v888_v32 = vld [vmem:[%s1375_s30 + $0xf4] ss:$8 sps:$4 sm:$0xff]  }
  0x7a   : > { %480 = vmatprep.subr.bf16.mxu0 %v852_v6  ;;  %v890_v33 = vld [vmem:[%s1375_s30 + $0xf0] ss:$8 sps:$4 sm:$0xff]   ;;  %s258_s18 = scalar_select %p257_p1, %s666_s7, 3  ;;  %v298_v36 = vshrl.u32 %v297_v35, 7 }
  0x7b   : > { %s252_s24 = sand.u32 1, %s1055_s13   ;;  %s703_s27 = sshll.u32 %s1087_s21, 2 }
  0x7c   : > { %s259_s0 = scalar_lea.vmem %s1503_s2, %s258_s18  ;;  %v299_v37 = vsub.s32 0, %v298_v36  ;;  %v303_v39 = vsub.s32 1, %v298_v36  ;;  %s665_s28 = sshll.u32 %s252_s24, 4 }
  0x7d   : > { %481 = vmatpush1.bf16.msra.mxu0 %v854_v7  ;;  %v295_v38 = vld [vmem:[%s259_s0] sm:$0x3]  ;;  %s532_s5 = sadd.s32 %s703_s27, %s666_s7  ;;  %s254_s29 = scalar_lea.vmem [#allocation7], %s665_s28 }
  0x7e   : > { %482 = vmatprep.subr.bf16.mxu0 %v855_v8  ;;  %v300_v40 = vrot.slane %v295_v38, %v299_v37  ;;  %v304_v41 = vrot.slane %v295_v38, %v303_v39  ;;  %s704_s22 = sshll.u32 %s532_s5, 7  ;;  %s536_s11 = sshll.u32 %s254_s29, 4  ;;  %s1426_s11 = int_to_ptr.vmem [resolvable:$true] %s536_s11 }
  0x7f   : > { %s1424_s26 = scalar_lea.hbm %s1504_s3, %s704_s22  ;;  %s520_s21 = scalar_lea.sflag [#allocation4], %s252_s24 }
  0x80   : > { %s953_s10 = scalar_lea.vmem %s1426_s11, 256  ;;  %p1535_p12 = scmp.ne.s32.totalorder %s1524_s9, 0 }
  0x81   : > { %483 = vmatpush1.bf16.msra.mxu0 %v857_v9  ;;  %p954_p5 = scmp.ne.s32.totalorder %s1426_s11, %s953_s10  ;;  %s1110_s30 = smov [#allocation7]  }
  0x82   : > { %484 = vmatprep.subr.bf16.mxu0 %v858_v10  ;;  %s957_s7 = sshll.u32 %s1110_s30, 4  ;;  %s958_s7 = int_to_ptr.vmem [resolvable:$false] %s957_s7 }
  0x83   : > { %p955_p7 = pnand %p954_p5, %p1535_p12  ;;  %s959_s18 = scalar_lea.vmem %s958_s7, 512 }
  0x84   : > { %p960_p2 = scmp.lt.s32.totalorder %s1426_s11, %s958_s7  ;;  %p961_p9 = scmp.lt.s32.totalorder %s959_s18, %s953_s10 }
  0x85   : > { %485 = vmatpush1.bf16.msra.mxu0 %v860_v11  ;;  %p956_p0 = pneg %p955_p7 }
  0x86   : > { %486 = vmatprep.subr.bf16.mxu0 %v861_v12  ;;  %p962_p8 = por %p961_p9, %p960_p2 }
  0x88   : > { %p963_p10 = pnand %p962_p8, %p956_p0 }
  0x89   : > { %487 = vmatpush1.bf16.msra.mxu0 %v863_v15 }
  0x8a   : > { %488 = vmatprep.subr.bf16.mxu0 %v864_v16 }
  0x8d   : > { %489 = vmatpush1.bf16.msra.mxu0 %v866_v17 }
  0x8e   : > { %490 = vmatprep.subr.bf16.mxu0 %v867_v18 }
  0x91   : > { %491 = vmatpush1.bf16.msra.mxu0 %v869_v19 }
  0x92   : > { %492 = vmatprep.subr.bf16.mxu0 %v870_v20 }
  0x95   : > { %493 = vmatpush1.bf16.msra.mxu0 %v872_v21 }
  0x96   : > { %494 = vmatprep.subr.bf16.mxu0 %v873_v22 }
  0x99   : > { %495 = vmatpush1.bf16.msra.mxu0 %v875_v23 }
  0x9a   : > { %496 = vmatprep.subr.bf16.mxu0 %v876_v24 }
  0x9d   : > { %497 = vmatpush1.bf16.msra.mxu0 %v878_v25 }
  0x9e   : > { %498 = vmatprep.subr.bf16.mxu0 %v879_v26 }
  0xa1   : > { %499 = vmatpush1.bf16.msra.mxu0 %v881_v27 }
  0xa2   : > { %500 = vmatprep.subr.bf16.mxu0 %v882_v28 }
  0xa5   : > { %501 = vmatpush1.bf16.msra.mxu0 %v884_v29 }
  0xa6   : > { %502 = vmatprep.subr.bf16.mxu0 %v885_v30 }
  0xa9   : > { %503 = vmatpush1.bf16.msra.mxu0 %v887_v31 }
  0xaa   : > { %504 = vmatprep.subr.bf16.mxu0 %v888_v32 }
  0xad   : > { %505 = vmatpush1.bf16.msra.mxu0 %v890_v33 }
  0xb0   : > { %507 = vmatmul.mubr.bf16.vlgmr.msra.gmra.mrb[0].mxu0 %v667_v34 }
 0x183   : > { %v508_v42 = vpop.f32.mrb[0].mxu0 }
 0x184   : > { %v509_v43 = vadd.f32 %v508_v42, %v300_v40  ;;  %v510_v44 = vpop.f32.mrb[1].mxu0 }
 0x185   : > { %v511_v45 = vadd.f32 %v510_v44, %v304_v41  ;;  %v512_v46 = vpop.f32.mrb[2].mxu0 }
 0x186   : > { %v515_v47 = vmax.f32 %v509_v43, 0.0  ;;  %v513_v48 = vpop.f32.mrb[3].mxu0 }
 0x187   : > { %v516_v49 = vmax.f32 %v511_v45, 0.0 }
 0x188   : > { %517 = vst [vmem:[%s254_s29] sm:$0xff] %v515_v47 }
 0x189   : > { %518 = vst [vmem:[%s254_s29 + $0x8] sm:$0xff] %v516_v49 }
 0x18a   : > { %966 = shalt.err (!%p963_p10)
}
 0x18b   : > { %s967_s15 = scalar_lea.hbm %s1424_s26, 256  ;;  %s971_s24 = scalar_lea.hbm %s1504_s3, 1024 }
 0x18c   : > { %p968_p6 = scmp.ne.s32.totalorder %s1424_s26, %s967_s15  ;;  %p972_p13 = scmp.lt.u32.totalorder %s1424_s26, %s1504_s3 }
 0x18d   : > { %p973_p11 = scmp.lt.u32.totalorder %s971_s24, %s967_s15  ;;  %p975_p5 = scmp.lt.u32.totalorder %s967_s15, %s1424_s26 }
 0x18e   : > { %p969_p4 = pnand %p968_p6, %p1535_p12 }
 0x18f   : > { %p974_p1 = por %p973_p11, %p972_p13 }
 0x190   : > { %p970_p3 = pneg %p969_p4 }
 0x191   : > { %p976_p7 = por %p975_p5, %p974_p1 }
 0x193   : > { %p977_p0 = pnand %p976_p7, %p970_p3 }
 0x195   : > { %980 = shalt.err (!%p977_p0)
}
 0x196   : > { %713 = dma.vmem_to_hbm [thread:$0]  (%p1535_p12), %s1426_s11, 256, %s1424_s26, %s520_s21  }
 0x197 PF: > { %p727_p2 = scmp.ge.s32.totalorder %s1103_s25, 2  ;;  %s548_s5 = sand.u32 1, %s1051_s12  }
 0x198   : > { %p1536_p9 = scmp.ne.s32.totalorder %s1526_s4, 0  ;;  %s549_s22 = scalar_lea.sflag [#allocation4], %s548_s5 }
 0x19a   : > { %p723_p8 = pnand %p727_p2, %p1536_p9 }
 0x19c   : > { %1046 = dma.done.wait (!%p723_p8), %s549_s22, 256  }
 0x19d   : > { %1048 = vsyncadd (!%p723_p8), %s549_s22, 4294967040  ;;  %s22_s25 = sadd.s32 1, %s1103_s25   ;;  %s1538_s9 = sld [smem:[#allocation17_spill]] }
 0x19e   : > { %p1454_p10 = scmp.ge.s32.totalorder %s22_s25, 6   ;;  %s1539_s11 = sld [smem:[#allocation16_spill]] }
 0x19f   : > { %s1540_s8 = sld [smem:[#allocation15_spill]]  ;;  %s1541_s21 = sld [smem:[#allocation11_spill]] }
 0x1a0   : > { %s1542_s22 = sld [smem:[#allocation12_spill]]  ;;  %s1543_s23 = sld [smem:[#allocation13_spill]] }
 0x1a1   : > { %s1544_s24 = sld [smem:[#allocation14_spill]]  ;;  %s1545_s12 = smov %s1055_s13 }
 0x1a2   : > { %s1546_s13 = smov %s1059_s14  ;;  %s1548_s15 = smov %s1067_s16 }
 0x1a3   : > { %s1547_s14 = smov %s1538_s9  ;;  %s1549_s16 = smov %s1071_s17 }
 0x1a4   : > { %s1550_s17 = smov %s1539_s11  ;;  %s1551_s18 = smov %s1079_s19 }
 0x1a5   : > { %s1552_s19 = smov %s1083_s20  ;;  %s1553_s20 = smov %s1540_s8 }
 0x1a6   :  { %21 = sbr.rel (!%p1454_p10) target bundleno = 14 (0xe), region = 93 }
 0x1ad   :  { %554 = vsyncpa [#allocation3], 1 }
 0x1ae   :  { %556 = vsyncpa [#allocation3 + $0x1], 1 }
 0x1af   :  { %557 = vsyncpa [#allocation6], 1 }
 0x1b0   :  { %559 = vsyncpa [#allocation6 + $0x1], 1 }
 0x1b1   :  { %560 = vsyncpa [#allocation4], 1 }
 0x1b2   :  { %562 = vsyncpa [#allocation4 + $0x1], 1 }

</bundles_post_ra>
